<compile_context>
chip_gen: v5e
topology: v5e:2x2
jax: 0.10.0
libtpu: 0.0.40
codegen_flags: <defaults>
</compile_context>

<pallas_src>
import functools

import jax
import jax.numpy as jnp
from jax import lax
from jax.experimental import pallas as pl
from jax.experimental.pallas import tpu as pltpu

LANES = 128
SUBLANES = 8  # f32 accumulator sublane count


def _folded_power(err, gamma):
    """err ** (gamma + 1)  ==  (err ** gamma) * err  (forward value only)."""
    p = float(gamma) + 1.0
    if p.is_integer():
        return lax.integer_pow(err, int(p))            # pure VALU multiplies
    if p > 0 and (2.0 * p).is_integer():
        return lax.integer_pow(err, int(p)) * jnp.sqrt(err)   # one EUP sqrt
    return err ** p                                    # generic exp/log path


def _focal_mse_kernel(x_ref, t_ref, o_ref, *, gamma, tile, sub_rows,
                      blocks_per_slice, num_blocks, rows, has_oob):
    j = pl.program_id(0)   # slice axis ("parallel")
    i = pl.program_id(1)   # reduction axis ("arbitrary")
    block = j * blocks_per_slice + i

    @pl.when(i == 0)
    def _():
        o_ref[...] = jnp.zeros_like(o_ref)

    n_sub = tile // sub_rows

    def accumulate(masked):
        def body(s, carry):
            start = s * sub_rows
            if not isinstance(start, int):
                start = pl.multiple_of(start, sub_rows)
            # In-kernel cast: free on the VPU under the memory bound; avoids an
            # HBM materialization of f32 copies for 16-bit inputs.
            x = x_ref[pl.ds(start, sub_rows), :].astype(jnp.float32)
            t = t_ref[pl.ds(start, sub_rows), :].astype(jnp.float32)
            err = x - t
            err = err * err                         # (input - target)^2
            loss = _folded_power(err, gamma)        # (err^gamma) * err
            if masked:
                # Only the single partial last block pays for the mask.
                row_ids = (block * tile + start
                           + lax.broadcasted_iota(jnp.int32, (sub_rows, LANES), 0))
                loss = jnp.where(row_ids < rows, loss, 0.0)
            # Fold the sub-chunk to one (8,128) vreg with pure VPU adds.
            return carry + loss.reshape(sub_rows // SUBLANES, SUBLANES, LANES).sum(axis=0)

        zero = jnp.zeros((SUBLANES, LANES), jnp.float32)
        if n_sub == 1:
            part = body(0, zero)
        else:
            part = lax.fori_loop(0, n_sub, body, zero, unroll=min(n_sub, 8))
        o_ref[...] += part.reshape(1, SUBLANES, LANES)

    has_partial = (rows % tile) != 0
    num_full = rows // tile

    if not has_partial and not has_oob:
        # Hot path: every logical block is full and in range -> no gating at all.
        accumulate(False)
    else:
        @pl.when(block < num_full)
        def _():
            accumulate(False)

        if has_partial:
            @pl.when(block == num_blocks - 1)
            def _():
                accumulate(True)
        # Clamped out-of-range logical blocks (block >= num_blocks) fall through
        # both branches and contribute nothing.


def _default_num_slices():
    # 2 only where a leading "parallel" axis can actually buy bandwidth
    # (v7x dual TensorCore, v4/v5p megacore); 1 on single-TC v5e/v6e.
    try:
        kind = jax.devices()[0].device_kind.lower()
    except Exception:
        return 1
    if "lite" in kind or "v5e" in kind or "v6e" in kind:
        return 1
    if "v7" in kind or "v5p" in kind or "v4" in kind:
        return 2
    return 1


def focal_mse_loss(inp, target, gamma=2.0, reduction="mean", *,
                   tile_rows=None, num_slices=None):
    assert inp.shape == target.shape
    gamma = float(gamma)          # must be static (trace-time specialization)
    n_elem = inp.size

    itemsize = jnp.dtype(inp.dtype).itemsize
    sub_align = {4: 8, 2: 16, 1: 32}.get(itemsize, 8)
    chunk = sub_align * LANES

    x = jnp.ravel(inp)
    t = jnp.ravel(target)

    # Aligned prefix goes through the Pallas kernel; the small tail
    # (< sub_align*128 elements) is handled with plain jnp -- no full-array
    # jnp.pad copy of the HBM-bound inputs.
    main = (n_elem // chunk) * chunk
    total = jnp.zeros((), jnp.float32)
    if main != n_elem:
        xt = x[main:].astype(jnp.float32)
        tt = t[main:].astype(jnp.float32)
        err_t = xt - tt
        err_t = err_t * err_t
        total = total + jnp.sum(_folded_power(err_t, gamma))

    if main > 0:
        rows = main // LANES
        if main == n_elem:
            x_main = x.reshape(rows, LANES)        # free bitcast of contiguous data
            t_main = t.reshape(rows, LANES)
        else:
            x_main = x[:main].reshape(rows, LANES)
            t_main = t[:main].reshape(rows, LANES)

        # DMA block: ~4 MiB per input (8192 rows f32 / 16384 rows bf16); with
        # 2 inputs x 2 pipeline buffers that is ~16 MiB of VMEM, made explicit
        # via vmem_limit_bytes below.
        if tile_rows is None:
            target_tile = (4 << 20) // (LANES * itemsize)
        else:
            target_tile = max(sub_align, (int(tile_rows) // sub_align) * sub_align)
        tile = min(target_tile, rows)

        # Inner compute sub-chunk: bounds elementwise intermediates (x, t, err,
        # loss), important on v7x's 64 MiB VMEM, without shrinking the DMA block.
        if tile <= 1024:
            sub_rows = tile
        elif tile % 1024 == 0:
            sub_rows = 1024
        else:
            sub_rows = tile
            for cand in range(1024, sub_align - 1, -sub_align):
                if tile % cand == 0:
                    sub_rows = cand
                    break

        num_blocks = pl.cdiv(rows, tile)
        if num_slices is None:
            num_slices = _default_num_slices()
        slices = max(1, min(int(num_slices), num_blocks))
        bps = pl.cdiv(num_blocks, slices)
        has_oob = slices * bps != num_blocks

        # Explicit VMEM budget: double-buffered input blocks + f32 intermediates
        # for one sub-chunk + accumulator/output, with headroom; capped below
        # physical VMEM (64 MiB on v7x, 128 MiB on v5e/v6e).
        block_bytes = tile * LANES * itemsize
        vmem_needed = 4 * block_bytes + 8 * sub_rows * LANES * 4 + (2 << 20)
        try:
            phys = int(pltpu.get_tpu_info().vmem_capacity_bytes)
        except Exception:
            phys = 64 << 20
        vmem_limit = int(min(max(vmem_needed, 32 << 20), (phys * 7) // 8))

        kernel = functools.partial(
            _focal_mse_kernel, gamma=gamma, tile=tile, sub_rows=sub_rows,
            blocks_per_slice=bps, num_blocks=num_blocks, rows=rows,
            has_oob=has_oob)

        def in_map(j, i):
            # Clamp fully out-of-range logical blocks (last slice when
            # num_blocks % slices != 0) onto an in-bounds one; the kernel skips
            # their contribution via pl.when.
            return (jnp.minimum(j * bps + i, num_blocks - 1), 0)

        out = pl.pallas_call(
            kernel,
            out_shape=jax.ShapeDtypeStruct((slices, SUBLANES, LANES), jnp.float32),
            grid_spec=pltpu.PrefetchScalarGridSpec(
                num_scalar_prefetch=0,
                grid=(slices, bps),
                in_specs=[
                    pl.BlockSpec((tile, LANES), in_map),
                    pl.BlockSpec((tile, LANES), in_map),
                ],
                out_specs=pl.BlockSpec((1, SUBLANES, LANES), lambda j, i: (j, 0, 0)),
            ),
            compiler_params=pltpu.CompilerParams(
                dimension_semantics=("parallel", "arbitrary"),
                vmem_limit_bytes=vmem_limit,
            ),
        )(x_main, t_main)
        total = total + jnp.sum(out)

    if reduction == "mean":
        return total / n_elem
    return total


def _reference(inp, target, gamma=2.0, reduction="mean"):
    err = (inp.astype(jnp.float32) - target.astype(jnp.float32)) ** 2
    loss = (err ** gamma) * err
    return jnp.mean(loss) if reduction == "mean" else jnp.sum(loss)


if __name__ == "__main__":
    key = jax.random.PRNGKey(0)
    keys = jax.random.split(key, 10)

    # Primary small NCHW example consistent with a conv-net regression target.
    x = jax.random.normal(keys[0], (2, 4, 16, 16), dtype=jnp.float32)
    y = jax.random.normal(keys[1], (2, 4, 16, 16), dtype=jnp.float32)

    out_mean = jax.block_until_ready(focal_mse_loss(x, y, gamma=2.0, reduction="mean"))
    out_sum = jax.block_until_ready(focal_mse_loss(x, y, gamma=2.0, reduction="sum"))
    out_g3 = jax.block_until_ready(focal_mse_loss(x, y, gamma=3.0, reduction="mean"))
    out_g15 = jax.block_until_ready(focal_mse_loss(x, y, gamma=1.5, reduction="mean"))
    assert jnp.allclose(out_mean, _reference(x, y, 2.0, "mean"), rtol=2e-4, atol=1e-6)
    assert jnp.allclose(out_sum, _reference(x, y, 2.0, "sum"), rtol=2e-4, atol=1e-6)
    assert jnp.allclose(out_g3, _reference(x, y, 3.0, "mean"), rtol=2e-4, atol=1e-6)
    assert jnp.allclose(out_g15, _reference(x, y, 1.5, "mean"), rtol=2e-4, atol=1e-6)

    # Larger (still ~1 MiB/tensor) case: exercises the inner fori_loop over
    # 1024-row sub-chunks with default tiling.
    xb = jax.random.normal(keys[2], (4, 8, 64, 128), dtype=jnp.float32)
    yb = jax.random.normal(keys[3], (4, 8, 64, 128), dtype=jnp.float32)
    outb = jax.block_until_ready(focal_mse_loss(xb, yb, gamma=2.0, reduction="mean"))
    assert jnp.allclose(outb, _reference(xb, yb, 2.0, "mean"), rtol=2e-4, atol=1e-6)

    # Multi-block / two-slice path with clamped OOB logical blocks.
    x2 = jax.random.normal(keys[4], (2, 4, 24, 16), dtype=jnp.float32)   # 3072 elems
    y2 = jax.random.normal(keys[5], (2, 4, 24, 16), dtype=jnp.float32)
    out2 = jax.block_until_ready(
        focal_mse_loss(x2, y2, gamma=2.0, reduction="mean", tile_rows=8, num_slices=2))
    assert jnp.allclose(out2, _reference(x2, y2, 2.0, "mean"), rtol=2e-4, atol=1e-6)

    # Partial-last-block masked path (rows=24, tile=16).
    out2b = jax.block_until_ready(
        focal_mse_loss(x2, y2, gamma=2.0, reduction="sum", tile_rows=16, num_slices=1))
    assert jnp.allclose(out2b, _reference(x2, y2, 2.0, "sum"), rtol=2e-4, atol=1e-6)

    # Unaligned element count: aligned prefix via the kernel + jnp tail.
    x3 = jax.random.normal(keys[6], (3, 5, 7, 11), dtype=jnp.float32)    # 1155 elems
    y3 = jax.random.normal(keys[7], (3, 5, 7, 11), dtype=jnp.float32)
    out3 = jax.block_until_ready(focal_mse_loss(x3, y3, gamma=2.0, reduction="sum"))
    assert jnp.allclose(out3, _reference(x3, y3, 2.0, "sum"), rtol=2e-4, atol=1e-6)

    # bfloat16 inputs (16-sublane alignment path, in-kernel f32 cast).
    x4 = jax.random.normal(keys[8], (2, 4, 16, 16), dtype=jnp.bfloat16)
    y4 = jax.random.normal(keys[9], (2, 4, 16, 16), dtype=jnp.bfloat16)
    out4 = jax.block_until_ready(focal_mse_loss(x4, y4, gamma=2.0, reduction="mean"))
    assert jnp.allclose(out4, _reference(x4, y4, 2.0, "mean"), rtol=1e-3, atol=1e-6)

    print("KERNEL_OK")
</pallas_src>

<mosaic_0001>
module attributes {stable_mosaic.version = 11 : i64} {
  func.func @_focal_mse_kernel(%arg0: i32, %arg1: i32, %arg2: memref<16x128xf32, #tpu.memory_space<vmem>>, %arg3: memref<16x128xf32, #tpu.memory_space<vmem>>, %arg4: memref<1x8x128xf32, #tpu.memory_space<vmem>>) attributes {dimension_semantics = [#tpu.dimension_semantics<parallel>, #tpu.dimension_semantics<arbitrary>], iteration_bounds = array<i64: 1, 1>, scalar_prefetch = 0 : i64, scratch_operands = 0 : i64, tpu.core_type = #tpu.core_type<tc>, window_params = [{transform_indices = @transform_0, window_bounds = array<i64: 16, 128>}, {transform_indices = @transform_1, window_bounds = array<i64: 16, 128>}, {transform_indices = @transform_2, window_bounds = array<i64: 1, 8, 128>}]} {
    %c0_i32 = arith.constant 0 : i32
    %0 = arith.cmpi eq, %arg1, %c0_i32 : i32
    %1 = arith.extui %0 : i1 to i32
    %c0_i32_0 = arith.constant 0 : i32
    %2 = arith.cmpi ne, %1, %c0_i32_0 : i32
    scf.if %2 {
      %cst_11 = arith.constant 0.000000e+00 : f32
      %17 = vector.broadcast %cst_11 : f32 to vector<1x8x128xf32>
      %c0_12 = arith.constant 0 : index
      %c0_13 = arith.constant 0 : index
      %c0_14 = arith.constant 0 : index
      %18 = vector.load %arg4[%c0_12, %c0_13, %c0_14] : memref<1x8x128xf32, #tpu.memory_space<vmem>>, vector<1x8x128xf32>
      tpu.vector_store %arg4[%c0_12, %c0_13, %c0_14], %17 {strides = array<i32>} : memref<1x8x128xf32, #tpu.memory_space<vmem>>, vector<1x8x128xf32>,
    } else {
    }
    %cst = arith.constant 0.000000e+00 : f32
    %3 = vector.broadcast %cst : f32 to vector<8x128xf32>
    %c0 = arith.constant 0 : index
    %c0_1 = arith.constant 0 : index
    %4 = vector.load %arg2[%c0, %c0_1] : memref<16x128xf32, #tpu.memory_space<vmem>>, vector<16x128xf32>
    %c0_2 = arith.constant 0 : index
    %c0_3 = arith.constant 0 : index
    %5 = vector.load %arg3[%c0_2, %c0_3] : memref<16x128xf32, #tpu.memory_space<vmem>>, vector<16x128xf32>
    %6 = arith.subf %4, %5 : vector<16x128xf32>
    %7 = arith.mulf %6, %6 : vector<16x128xf32>
    %8 = arith.mulf %7, %7 : vector<16x128xf32>
    %9 = arith.mulf %7, %8 : vector<16x128xf32>
    %10 = vector.shape_cast %9 : vector<16x128xf32> to vector<2x8x128xf32>
    %cst_4 = arith.constant dense<0.000000e+00> : vector<8x128xf32>
    %11 = vector.multi_reduction <add>, %10, %cst_4 [0] : vector<2x8x128xf32> to vector<8x128xf32>
    %12 = arith.addf %3, %11 : vector<8x128xf32>
    %c0_5 = arith.constant 0 : index
    %c0_6 = arith.constant 0 : index
    %c0_7 = arith.constant 0 : index
    %13 = vector.load %arg4[%c0_5, %c0_6, %c0_7] : memref<1x8x128xf32, #tpu.memory_space<vmem>>, vector<1x8x128xf32>
    %14 = vector.shape_cast %12 : vector<8x128xf32> to vector<1x8x128xf32>
    %15 = arith.addf %13, %14 : vector<1x8x128xf32>
    %c0_8 = arith.constant 0 : index
    %c0_9 = arith.constant 0 : index
    %c0_10 = arith.constant 0 : index
    %16 = vector.load %arg4[%c0_8, %c0_9, %c0_10] : memref<1x8x128xf32, #tpu.memory_space<vmem>>, vector<1x8x128xf32>
    tpu.vector_store %arg4[%c0_8, %c0_9, %c0_10], %15 {strides = array<i32>} : memref<1x8x128xf32, #tpu.memory_space<vmem>>, vector<1x8x128xf32>,
    return
  }
  func.func @transform_0(%arg0: i32, %arg1: i32) -> (i32, i32) {
    %c1_i32 = arith.constant 1 : i32
    %0 = arith.muli %arg0, %c1_i32 : i32
    %1 = arith.addi %0, %arg1 : i32
    %c0_i32 = arith.constant 0 : i32
    %2 = arith.minsi %1, %c0_i32 : i32
    %c0_i32_0 = arith.constant 0 : i32
    %c0_i32_1 = arith.constant 0 : i32
    return %2, %c0_i32_0 : i32, i32
  }
  func.func @transform_1(%arg0: i32, %arg1: i32) -> (i32, i32) {
    %c1_i32 = arith.constant 1 : i32
    %0 = arith.muli %arg0, %c1_i32 : i32
    %1 = arith.addi %0, %arg1 : i32
    %c0_i32 = arith.constant 0 : i32
    %2 = arith.minsi %1, %c0_i32 : i32
    %c0_i32_0 = arith.constant 0 : i32
    %c0_i32_1 = arith.constant 0 : i32
    return %2, %c0_i32_0 : i32, i32
  }
  func.func @transform_2(%arg0: i32, %arg1: i32) -> (i32, i32, i32) {
    %c0_i32 = arith.constant 0 : i32
    %c0_i32_0 = arith.constant 0 : i32
    %c0_i32_1 = arith.constant 0 : i32
    return %arg0, %c0_i32, %c0_i32_0 : i32, i32, i32
  }
}

</mosaic_0001>

<bundles_post_ra>
// kernel: tpu_custom_call.1
= control target key start
LH: loop header
LB: loop body
LE: loop exit
PB: predicated region body
PF: predicated region fallthrough
CT: control target
= control target key end

     0   :  { %7 = vsyncpa [#allocation3], 0  ;;  %s221_s0 = inlined_call_operand.hbm [shape: f32[16,128], index: 0, kind: input, shape index: {}]   ;;  %s222_s1 = inlined_call_operand.hbm [shape: f32[16,128], index: 1, kind: input, shape index: {}]   ;;  %s223_s2 = inlined_call_operand.hbm [shape: f32[1,8,128], index: 2, kind: output, shape index: {}]  }
   0x1   :  { %8 = vsyncpa [#allocation6], 0 }
   0x2   :  { %9 = vsyncpa [#allocation4], 0  ;;  %s20_s11 = sshll.u32 %s221_s0, 4  ;;  %s192_s12 = smov [#allocation2]   ;;  %s21_s11 = int_to_ptr.hbm [resolvable:$true] %s20_s11 }
   0x3   :  { %s22_s13 = sshll.u32 %s192_s12, 4  ;;  %s39_s16 = sshll.u32 %s222_s1, 4  ;;  %s23_s13 = int_to_ptr.vmem [resolvable:$true] %s22_s13  ;;  %s40_s16 = int_to_ptr.hbm [resolvable:$true] %s39_s16 }
   0x4   :  { %s193_s17 = smov 128   ;;  %s194_s18 = smov 8  }
   0x5   :  { %28 = dma.hbm_to_vmem [thread:$0]  %s21_s11, 256, %s23_s13, [#allocation3], %s193_s17, %s193_s17, %s194_s18  }
   0x6   :  { %s195_s19 = smov [#allocation5]  }
   0x7   :  { %s41_s20 = sshll.u32 %s195_s19, 4  ;;  %s42_s20 = int_to_ptr.vmem [resolvable:$true] %s41_s20 }
   0x8   :  { %47 = dma.hbm_to_vmem [thread:$0]  %s40_s16, 256, %s42_s20, [#allocation6], %s193_s17, %s193_s17, %s194_s18  }
   0x9   :  { %186 = dma.done.wait [#allocation3], 256  }
   0xa   :  { %187 = vsyncadd [#allocation3], 4294967040 }
   0xb   :  { %188 = dma.done.wait [#allocation6], 256  }
   0xc   :  { %189 = vsyncadd [#allocation6], 4294967040  ;;  %v69_v0 = vld [vmem:[#allocation2] sm:$0xff]  ;;  %v70_v1 = vld [vmem:[#allocation2 + $0x8] sm:$0xff]  ;;  %s196_s0 = smov [#allocation7]   ;;  %s93_s23 = sshll.u32 %s223_s2, 4  ;;  %s94_s23 = int_to_ptr.hbm [resolvable:$true] %s93_s23 }
   0xd   :  { %v71_v2 = vld [vmem:[#allocation5] sm:$0xff]  ;;  %v72_v3 = vld [vmem:[#allocation5 + $0x8] sm:$0xff]  ;;  %s91_s1 = sshll.u32 %s196_s0, 4  ;;  %s92_s1 = int_to_ptr.vmem [resolvable:$true] %s91_s1 }
   0xe   :  { %v73_v4 = vsub.f32 %v69_v0, %v71_v2  ;;  %v74_v5 = vsub.f32 %v70_v1, %v72_v3 }
  0x10   :  { %v75_v6 = vmul.f32 %v73_v4, %v73_v4  ;;  %v76_v7 = vmul.f32 %v74_v5, %v74_v5 }
  0x12   :  { %v77_v8 = vmul.f32 %v75_v6, %v75_v6  ;;  %v78_v9 = vmul.f32 %v76_v7, %v76_v7 }
  0x14   :  { %v79_v10 = vmul.f32 %v77_v8, %v75_v6  ;;  %v80_v11 = vmul.f32 %v78_v9, %v76_v7 }
  0x16   :  { %v81_v12 = vadd.f32 %v80_v11, %v79_v10 }
  0x18   :  { %85 = vst [vmem:[#allocation7] sm:$0xff] %v81_v12 }
  0x19   :  { %96 = dma.vmem_to_hbm [thread:$0]  %s92_s1, 128, %s94_s23, [#allocation4]  }
  0x1a   :  { %190 = dma.done.wait [#allocation4], 128  }
  0x1b   :  { %191 = vsyncadd [#allocation4], 4294967168 }
  0x1c   :  { %101 = vsyncpa [#allocation3], 1 }
  0x1d   :  { %102 = vsyncpa [#allocation6], 1 }
  0x1e   :  { %103 = vsyncpa [#allocation4], 1 }

</bundles_post_ra>
